<compile_context>
chip_gen: v6e
topology: v6e:2x2x1
jax: 0.10.0
libtpu: 0.0.40
codegen_flags: <defaults>
</compile_context>

<pallas_src>
import functools

import jax
import jax.numpy as jnp
import numpy as np
from jax import lax
from jax.experimental import pallas as pl
from jax.experimental.pallas import tpu as pltpu


def _apply_pow(x, div, beta):
    # out = x * div^{-beta}, transcendentals go to the EUP.
    if beta == 0.75:
        t = lax.rsqrt(div)                  # div^-0.5
        return x * (t * jnp.sqrt(t))        # div^-0.75
    return x * jnp.exp((-beta) * jnp.log(div))


def _lrn_kernel_band(band_ref, x_ref, o_ref, *, beta):
    # x_ref / o_ref block: (C, T_HW); band_ref: (C, C) with alpha/local_size
    # folded into the band entries (zeros outside the channel window).
    x = x_ref[...].astype(jnp.float32)
    x2 = x * x
    acc = jnp.dot(band_ref[...], x2,
                  preferred_element_type=jnp.float32,
                  precision=lax.Precision.HIGHEST)
    div = acc + 1.0
    o_ref[...] = _apply_pow(x, div, beta).astype(o_ref.dtype)


def _lrn_kernel_diag(x_ref, o_ref, *, scale, beta):
    # local_size == 1: window is just the element itself -> pure VPU path.
    x = x_ref[...].astype(jnp.float32)
    div = (x * x) * scale + 1.0
    o_ref[...] = _apply_pow(x, div, beta).astype(o_ref.dtype)


def lrn_forward(x, *, local_size=1, alpha=1.0, beta=0.75):
    """x: (N, C, H, W) float32. Returns LRN(x) (ACROSS_CHANNELS) with same shape/dtype."""
    assert local_size % 2 == 1, "odd local_size assumed (as in typical LRN use)"
    n, c, h, w = x.shape
    hw = h * w
    pad = (local_size - 1) // 2

    x3 = x.reshape(n, c, hw)

    # ---- tile sizing: ~2 MiB input blocks, lane dim a multiple of 128 --------
    LANE = 128
    n_cols = pl.cdiv(hw, LANE)                       # 128-lane columns covering HW
    target_block_bytes = 2 * 1024 * 1024
    max_cols = max(1, target_block_bytes // (c * 4 * LANE))
    t_cols = min(n_cols, max_cols)
    # >= 2 grid steps when possible (v7x: 2 TensorCores share the chip)
    if n == 1 and t_cols >= n_cols and n_cols > 1:
        t_cols = pl.cdiv(n_cols, 2)
    t_hw = t_cols * LANE
    grid = (n, pl.cdiv(hw, t_hw))

    elems = n * c * hw
    if pad > 0:
        flops = elems * (2 * c + 5)
        kernel = functools.partial(_lrn_kernel_band, beta=beta)
        # band[i, j] = alpha/local_size if |i-j| <= pad else 0  (zero padding at
        # the channel boundaries and the AvgPool3d count_include_pad divisor are
        # both encoded here).
        idx = np.arange(c)
        band_np = (np.abs(idx[:, None] - idx[None, :]) <= pad).astype(np.float32)
        band = jnp.asarray(band_np * (alpha / float(local_size)))
        in_specs = [
            pl.BlockSpec((c, c), lambda i, j: (0, 0)),              # resident
            pl.BlockSpec((None, c, t_hw), lambda i, j: (i, 0, j)),
        ]
        args = (band, x3)
    else:
        flops = elems * 5
        kernel = functools.partial(
            _lrn_kernel_diag, scale=alpha / float(local_size), beta=beta)
        in_specs = [pl.BlockSpec((None, c, t_hw), lambda i, j: (i, 0, j))]
        args = (x3,)

    cost = pl.CostEstimate(
        flops=int(flops),
        transcendentals=int(2 * elems),
        bytes_accessed=int(2 * elems * 4),
    )

    out = pl.pallas_call(
        kernel,
        out_shape=jax.ShapeDtypeStruct((n, c, hw), x.dtype),
        grid_spec=pltpu.PrefetchScalarGridSpec(
            num_scalar_prefetch=0,
            grid=grid,
            in_specs=in_specs,
            out_specs=pl.BlockSpec((None, c, t_hw), lambda i, j: (i, 0, j)),
        ),
        compiler_params=pltpu.CompilerParams(
            dimension_semantics=("parallel", "parallel"),
            vmem_limit_bytes=32 * 1024 * 1024,
        ),
        cost_estimate=cost,
    )(*args)

    return out.reshape(n, c, h, w)


def _lrn_reference(x, *, local_size=1, alpha=1.0, beta=0.75):
    """Pure-JAX reference mirroring the PyTorch module."""
    pad = (local_size - 1) // 2
    x2 = x * x
    x2p = jnp.pad(x2, ((0, 0), (pad, pad), (0, 0), (0, 0)))
    c = x.shape[1]
    acc = sum(x2p[:, d:d + c] for d in range(local_size))
    div = (acc / local_size) * alpha + 1.0
    div = div ** beta
    return x / div


if __name__ == "__main__":
    key = jax.random.PRNGKey(0)

    # main shape: lane-aligned HW
    N, C, H, W = 2, 8, 16, 16
    x = jax.random.normal(key, (N, C, H, W), dtype=jnp.float32)

    configs = [
        dict(local_size=1, alpha=1.0, beta=0.75),   # nn default args (diag path)
        dict(local_size=5, alpha=1e-4, beta=0.75),  # AlexNet-style LRN (band path)
    ]
    for cfg in configs:
        out = jax.block_until_ready(lrn_forward(x, **cfg))
        ref = _lrn_reference(x, **cfg)
        np.testing.assert_allclose(np.asarray(out), np.asarray(ref),
                                   rtol=1e-5, atol=1e-5)

    # exercise ragged (non-128-multiple) HW and the general-beta path
    x2 = jax.random.normal(jax.random.PRNGKey(1), (2, 8, 11, 11), dtype=jnp.float32)
    cfg = dict(local_size=3, alpha=2e-4, beta=0.6)
    out = jax.block_until_ready(lrn_forward(x2, **cfg))
    ref = _lrn_reference(x2, **cfg)
    np.testing.assert_allclose(np.asarray(out), np.asarray(ref),
                               rtol=1e-5, atol=1e-5)

    print("KERNEL_OK")
</pallas_src>

<mosaic_0001>
module attributes {stable_mosaic.version = 11 : i64} {
  func.func @_lrn_kernel_diag(%arg0: i32, %arg1: i32, %arg2: memref<1x8x256xf32, #tpu.memory_space<vmem>>, %arg3: memref<1x8x256xf32, #tpu.memory_space<vmem>>) attributes {dimension_semantics = [#tpu.dimension_semantics<parallel>, #tpu.dimension_semantics<parallel>], iteration_bounds = array<i64: 2, 1>, scalar_prefetch = 0 : i64, scratch_operands = 0 : i64, tpu.core_type = #tpu.core_type<tc>, window_params = [{transform_indices = @transform_0, window_bounds = array<i64: 1, 8, 256>}, {transform_indices = @transform_1, window_bounds = array<i64: 1, 8, 256>}]} {
    %c0 = arith.constant 0 : index
    %c0_0 = arith.constant 0 : index
    %c0_1 = arith.constant 0 : index
    %0 = vector.load %arg2[%c0, %c0_0, %c0_1] : memref<1x8x256xf32, #tpu.memory_space<vmem>>, vector<1x8x256xf32>
    %1 = vector.shape_cast %0 : vector<1x8x256xf32> to vector<8x256xf32>
    %2 = arith.mulf %1, %1 : vector<8x256xf32>
    %cst = arith.constant 1.000000e+00 : f32
    %3 = vector.broadcast %cst : f32 to vector<8x256xf32>
    %4 = arith.mulf %2, %3 : vector<8x256xf32>
    %cst_2 = arith.constant 1.000000e+00 : f32
    %5 = vector.broadcast %cst_2 : f32 to vector<8x256xf32>
    %6 = arith.addf %4, %5 : vector<8x256xf32>
    %7 = math.rsqrt %6 : vector<8x256xf32>
    %8 = math.sqrt %7 : vector<8x256xf32>
    %9 = arith.mulf %7, %8 : vector<8x256xf32>
    %10 = arith.mulf %1, %9 : vector<8x256xf32>
    %c0_3 = arith.constant 0 : index
    %c0_4 = arith.constant 0 : index
    %c0_5 = arith.constant 0 : index
    %11 = vector.load %arg3[%c0_3, %c0_4, %c0_5] : memref<1x8x256xf32, #tpu.memory_space<vmem>>, vector<1x8x256xf32>
    %12 = vector.shape_cast %11 : vector<1x8x256xf32> to vector<8x256xf32>
    %13 = vector.shape_cast %10 : vector<8x256xf32> to vector<1x8x256xf32>
    tpu.vector_store %arg3[%c0_3, %c0_4, %c0_5], %13 {strides = array<i32>} : memref<1x8x256xf32, #tpu.memory_space<vmem>>, vector<1x8x256xf32>,
    return
  }
  func.func @transform_0(%arg0: i32, %arg1: i32) -> (i32, i32, i32) {
    %c0_i32 = arith.constant 0 : i32
    %c0_i32_0 = arith.constant 0 : i32
    return %arg0, %c0_i32, %arg1 : i32, i32, i32
  }
  func.func @transform_1(%arg0: i32, %arg1: i32) -> (i32, i32, i32) {
    %c0_i32 = arith.constant 0 : i32
    %c0_i32_0 = arith.constant 0 : i32
    return %arg0, %c0_i32, %arg1 : i32, i32, i32
  }
}

</mosaic_0001>

<bundles_post_ra>
// kernel: tpu_custom_call.1
= control target key start
LH: loop header
LB: loop body
LE: loop exit
PB: predicated region body
PF: predicated region fallthrough
CT: control target
= control target key end

     0   :  { %6 = vsyncpa [#allocation3], 0  ;;  %s635_s0 = inlined_call_operand.hbm [shape: f32[2,8,256], index: 0, kind: input, shape index: {}]   ;;  %s636_s1 = inlined_call_operand.hbm [shape: f32[2,8,256], index: 1, kind: output, shape index: {}]  }
   0x1   :  { %8 = vsyncpa [#allocation3 + $0x1], 0 }
   0x2   :  { %9 = vsyncpa [#allocation4], 0 }
   0x3   :  { %11 = vsyncpa [#allocation4 + $0x1], 0  ;;  %s491_s6 = smov 0   ;;  %s493_s7 = smov 0  }
   0x4   :  { %s495_s8 = smov 0   ;;  %s497_s9 = smov 0  }
   0x5   :  { %s499_s10 = smov 0   ;;  %s501_s11 = smov 0  }
   0x6 LB: > { %s282_s12 = sadd.s32 4294967295, %s477_s11   ;;  %s283_s13 = sadd.s32 4294967294, %s477_s11   ;;  %s477_s11 = sphi %s501_s11, %s17_s11   ;;  %s473_s10 = sphi %s499_s10, %s648_s10   ;;  %s469_s9 = sphi %s497_s9, %s647_s9   ;;  %s465_s8 = sphi %s495_s8, %s646_s8   ;;  %s461_s7 = sphi %s493_s7, %s645_s7   ;;  %s457_s6 = sphi %s491_s6, %s644_s6  }
   0x7   : > { %s29_s14 = sadd.s32 1, %s473_s10  ;;  %s38_s15 = sadd.s32 1, %s465_s8 }
   0x8   : > { %p31_p0 = scmp.ge.s32.totalorder %s29_s14, 2  ;;  %p45_p1 = scmp.ne.s32.totalorder %s465_s8, %s461_s7 }
   0x9   : > { %p46_p2 = scmp.eq.s32.totalorder %s477_s11, 0  ;;  %p51_p3 = scmp.ne.s32.totalorder %s461_s7, %s457_s6 }
   0xa   : > { %s650_s14 = smov (%p31_p0, %s29_s14), 0  ;;  %p52_p5 = scmp.eq.s32.totalorder %s282_s12, 0 }
   0xb   : > { %p532_p4 = por %p46_p2, %p45_p1  ;;  %s33_s17 = ssub.s32 %s473_s10, %s650_s14 }
   0xc   : > { %p77_p6 = scmp.eq.s32.totalorder %s282_s12, 1  ;;  %p36_p7 = scmp.eq.s32.totalorder %s33_s17, 0 }
   0xd   : > { %p538_p8 = por %p52_p5, %p51_p3  ;;  %p83_p10 = scmp.eq.s32.totalorder %s283_s13, 1 }
   0xe   : > { %p542_p9 = por %p77_p6, %p45_p1  ;;  %p311_p13 = scmp.lt.s32.totalorder %s477_s11, 2 }
   0xf   : > { %s547_s20 = scalar_select %p36_p7, %s465_s8, %s38_s15  }
  0x10   : > { %p549_p11 = por %p83_p10, %p51_p3  ;;  %s103_s22 = sand.u32 1, %s465_s8  }
  0x11   : > { %s286_s23 = sshll.u32 %s103_s22, 4  ;;  %s297_s24 = sshll.u32 %s473_s10, 8 }
  0x12   : > { %s640_s21 = scalar_select %p549_p11, 1, 0 }
  0x13   : > { %s115_s27 = scalar_lea.hbm %s635_s0, %s297_s24  ;;  %s107_s28 = scalar_lea.vmem [#allocation2], %s286_s23 }
  0x14   : > { %s117_s29 = sshll.u32 %s107_s28, 4  ;;  %p562_p0 = pnand %p311_p13, %p532_p4  ;;  %s118_s29 = int_to_ptr.vmem [resolvable:$true] %s117_s29 }
  0x15   : > { %p289_p1 = scmp.ge.s32.totalorder %s477_s11, 1  ;;  %p122_p2 = scmp.lt.s32.totalorder %s477_s11, 3 }
  0x16   : > { %s104_s2 = scalar_lea.sflag [#allocation3], %s103_s22  ;;  %p371_p3 = pneg %p562_p0 }
  0x17   : > { %s382_s3 = scalar_lea.vmem %s118_s29, 256  ;;  %s479_s4 = smov [#allocation2]  }
  0x18   : > { %p383_p5 = scmp.ne.s32.totalorder %s118_s29, %s382_s3  ;;  %s387_s5 = sshll.u32 %s479_s4, 4  ;;  %s388_s5 = int_to_ptr.vmem [resolvable:$false] %s387_s5 }
  0x19   : > { %s389_s12 = scalar_lea.vmem %s388_s5, 512  ;;  %p390_p10 = scmp.lt.s32.totalorder %s118_s29, %s388_s5 }
  0x1a   : > { %p385_p6 = pnand %p383_p5, %p371_p3  ;;  %p391_p12 = scmp.lt.s32.totalorder %s389_s12, %s382_s3 }
  0x1c   : > { %p386_p7 = pneg %p385_p6  ;;  %p392_p4 = por %p391_p12, %p390_p10 }
  0x1e   : > { %p393_p13 = pnand %p392_p4, %p386_p7 }
  0x20   : > { %396 = shalt.err (!%p393_p13)
}
  0x21   : > { %306 = dma.hbm_to_vmem [thread:$0]  (!%p562_p0), %s115_s27, 256, %s118_s29, %s104_s2  }
  0x22   : > { %p123_p11 = pnand %p289_p1, %p122_p2 }
  0x23   : > { %s577_s13 = sand.u32 (!%p123_p11), 1, %s461_s7  }
  0x24   : > { %126 = sbr.rel (%p123_p11) target bundleno = 97 (0x61), region = 24  ;;  %s290_s15 = sshll.u32 (!%p123_p11), %s577_s13, 4 }
  0x25   : > { %s129_s16 = scalar_lea.sflag (!%p123_p11), [#allocation3], %s577_s13  ;;  %s132_s17 = scalar_lea.vmem (!%p123_p11), [#allocation2], %s290_s15 }
  0x29   : > { %448 = dma.done.wait (%p538_p8), %s129_s16, 256  }
  0x2a   : > { %450 = vsyncadd (%p538_p8), %s129_s16, 4294967040  ;;  %v153_v0 = vld [vmem:[%s132_s17] sm:$0xff]  ;;  %v154_v1 = vld [vmem:[%s132_s17 + $0x8] sm:$0xff]  ;;  %s150_s18 = scalar_lea.vmem [#allocation5], %s290_s15  ;;  %s298_s23 = sshll.u32 %s469_s9, 8 }
  0x2b   : > { %v155_v2 = vmul.f32 %v153_v0, %v153_v0  ;;  %v156_v3 = vmul.f32 %v154_v1, %v154_v1  ;;  %s198_s22 = sshll.u32 %s150_s18, 4  ;;  %s196_s26 = scalar_lea.hbm %s636_s1, %s298_s23  ;;  %s590_s22 = int_to_ptr.vmem [resolvable:$true] %s198_s22 }
  0x2c   : > { %s182_s27 = scalar_lea.sflag [#allocation4], %s577_s13  ;;  %s397_s28 = scalar_lea.vmem %s590_s22, 256 }
  0x2d   : > { %v157_v4 = vadd.f32 1.0, %v155_v2  ;;  %v158_v5 = vadd.f32 1.0, %v156_v3  ;;  %p398_p8 = scmp.ne.s32.totalorder %s590_s22, %s397_s28  ;;  %s480_s9 = smov [#allocation5]  }
  0x2e   : > { %s401_s29 = sshll.u32 %s480_s9, 4  ;;  %s402_s29 = int_to_ptr.vmem [resolvable:$false] %s401_s29 }
  0x2f   : > { %361 = vrsqrt.f32 %v157_v4  ;;  %p399_p11 = pnand %p398_p8, %p542_p9  ;;  %s403_s30 = scalar_lea.vmem %s402_s29, 512 }
  0x30   : > { %363 = vrsqrt.f32 %v158_v5  ;;  %p404_p0 = scmp.lt.s32.totalorder %s590_s22, %s402_s29  ;;  %p405_p1 = scmp.lt.s32.totalorder %s403_s30, %s397_s28 }
  0x31   : > { %p400_p12 = pneg %p399_p11 }
  0x32   : > { %p406_p2 = por %p405_p1, %p404_p0 }
  0x34   : > { %p407_p3 = pnand %p406_p2, %p400_p12 }
  0x3c   : > { %v362_v6 = vpop.eup %361 }
  0x3d   : > { %v364_v7 = vpop.eup %363  ;;  %365 = vrsqrt.f32 %v362_v6  ;;  %vm163_vm0 = vcmp.eq.f32.partialorder %v362_v6, inf  ;;  %v166_v9 = vand.u32 2147483648, %v362_v6  ;;  %vm165_vm1 = vcmp.eq.f32.partialorder %v362_v6, 0.0 }
  0x3e   : > { %367 = vrsqrt.f32 %v364_v7  ;;  %vm170_vm2 = vcmp.eq.f32.partialorder %v364_v7, inf  ;;  %v173_v12 = vand.u32 2147483648, %v364_v7  ;;  %vm172_vm3 = vcmp.eq.f32.partialorder %v364_v7, 0.0 }
  0x4a   : > { %v366_v8 = vpop.eup %365 }
  0x4b   : > { %v368_v10 = vpop.eup %367  ;;  %v162_v11 = vmul.f32 %v366_v8, %v362_v6 }
  0x4c   : > { %v169_v13 = vmul.f32 %v368_v10, %v364_v7 }
  0x4d   : > { %v164_v14 = vsel %vm163_vm0, %v362_v6, %v162_v11 }
  0x4e   : > { %v167_v15 = vsel %vm165_vm1, %v166_v9, %v164_v14  ;;  %v171_v16 = vsel %vm170_vm2, %v364_v7, %v169_v13 }
  0x4f   : > { %v175_v17 = vmul.f32 %v362_v6, %v167_v15  ;;  %v174_v18 = vsel %vm172_vm3, %v173_v12, %v171_v16 }
  0x50   : > { %v176_v19 = vmul.f32 %v364_v7, %v174_v18 }
  0x51   : > { %v177_v20 = vmul.f32 %v175_v17, %v153_v0 }
  0x52   : > { %v178_v21 = vmul.f32 %v176_v19, %v154_v1 }
  0x53   : > { %179 = vst [vmem:[%s150_s18] sm:$0xff] %v177_v20 }
  0x54   : > { %180 = vst [vmem:[%s150_s18 + $0x8] sm:$0xff] %v178_v21 }
  0x55   : > { %410 = shalt.err (!%p407_p3)
}
  0x56   : > { %s411_s2 = scalar_lea.hbm %s196_s26, 256  ;;  %s415_s5 = scalar_lea.hbm %s636_s1, 512 }
  0x57   : > { %p412_p5 = scmp.ne.s32.totalorder %s196_s26, %s411_s2  ;;  %p416_p10 = scmp.lt.s32.totalorder %s196_s26, %s636_s1 }
  0x58   : > { %p417_p4 = scmp.lt.s32.totalorder %s415_s5, %s411_s2 }
  0x59   : > { %p413_p6 = pnand %p412_p5, %p542_p9 }
  0x5a   : > { %p418_p13 = por %p417_p4, %p416_p10 }
  0x5b   : > { %p414_p7 = pneg %p413_p6 }
  0x5d   : > { %p419_p8 = pnand %p418_p13, %p414_p7 }
  0x5f   : > { %422 = shalt.err (!%p419_p8)
}
  0x60   : > { %301 = dma.vmem_to_hbm [thread:$0]  (%p542_p9), %s590_s22, 256, %s196_s26, %s182_s27  }
  0x61 PF: > { %s210_s15 = sand.u32 1, %s457_s6   ;;  %p642_p11 = scmp.ne.s32.totalorder %s640_s21, 0 }
  0x62   : > { %p643_p12 = scmp.ge.s32.totalorder %s477_s11, 2  ;;  %s211_s16 = scalar_lea.sflag [#allocation4], %s210_s15 }
  0x64   : > { %p308_p0 = pnand %p643_p12, %p642_p11 }
  0x66   : > { %p309_p1 = pneg %p308_p0 }
  0x68   : > { %452 = dma.done.wait (%p309_p1), %s211_s16, 256  }
  0x69   : > { %454 = vsyncadd (%p309_p1), %s211_s16, 4294967040  ;;  %s17_s11 = sadd.s32 1, %s477_s11   ;;  %s644_s6 = smov %s461_s7 }
  0x6a   : > { %p14_p2 = scmp.ge.s32.totalorder %s17_s11, 4   ;;  %s645_s7 = smov %s465_s8 }
  0x6b   : > { %s646_s8 = smov %s547_s20  ;;  %s647_s9 = smov %s473_s10 }
  0x6c   : > { %s648_s10 = smov %s650_s14  ;;  %16 = sbr.rel (!%p14_p2) target bundleno = 6 (0x6), region = 69 }
  0x71   :  { %216 = vsyncpa [#allocation3], 1 }
  0x72   :  { %218 = vsyncpa [#allocation3 + $0x1], 1 }
  0x73   :  { %219 = vsyncpa [#allocation4], 1 }
  0x74   :  { %221 = vsyncpa [#allocation4 + $0x1], 1 }

</bundles_post_ra>
